<compile_context>
chip_gen: v6e
topology: v6e:2x2x1
jax: 0.10.0
libtpu: 0.0.40
codegen_flags: <defaults>
</compile_context>

<pallas_src>
import jax
import jax.numpy as jnp
from jax.experimental import pallas as pl
from jax.experimental.pallas import tpu as pltpu

NUM_BITS = 8
QMAX = 2.0 ** NUM_BITS - 1.0  # 255.0

# Tile caps: ~2.3 MiB of double-buffered VMEM per grid step -> fits every generation's
# scoped-VMEM default (v5e 16 MiB, v6e/v7x 32 MiB) with large headroom.
TM_MAX = 256
TN_MAX = 256
TK_MAX = 512


def _round_up(a, b):
    return (a + b - 1) // b * b


def _tile_sizes(M, N, K):
    tm = min(TM_MAX, _round_up(M, 8))     # sublane-aligned rows
    tn = min(TN_MAX, _round_up(N, 128))   # lane-dense output columns
    tk = min(TK_MAX, _round_up(K, 128))   # MXU-friendly contraction tile
    return tm, tn, tk


def _qparams(t):
    """min/max -> (scale, zero_point, 1/scale), matching QParam.update_statistic +
    calcScaleZeroPoint. The eps guard only deviates for an all-zero tensor, where the
    original module would produce inf/NaN."""
    t_max = jnp.maximum(jnp.max(t), 0.0)
    t_min = jnp.minimum(jnp.min(t), 0.0)
    scale = (t_max - t_min) / QMAX
    scale = jnp.maximum(scale, jnp.float32(1e-12))
    inv_scale = 1.0 / scale
    zp = jnp.round(jnp.clip(QMAX - t_max * inv_scale, 0.0, QMAX))
    return scale, zp, inv_scale


# ---------------------------------------------------------------------------
# Kernel 1: fused activation fake-quant (integer levels) + bf16 MXU matmul
#           + K-reduction accumulator + bias epilogue.
#   params_ref (SMEM f32[3]) = [1/scale_x, zp_x, scale_x*scale_w]
# ---------------------------------------------------------------------------
def _qlinear_matmul_kernel(params_ref, x_ref, w_ref, b_ref, o_ref, acc_ref):
    k = pl.program_id(2)

    @pl.when(k == 0)
    def _():
        acc_ref[...] = jnp.zeros_like(acc_ref)

    inv_sx = params_ref[0]
    zp_x = params_ref[1]

    # Activation fake-quant integer levels (f32 elementwise math; bf16 only at the MXU,
    # where the integer levels in [-255, 255] are exactly representable).
    q_x = jnp.round(jnp.clip(zp_x + x_ref[...] * inv_sx, 0.0, QMAX)) - zp_x
    acc_ref[...] += jnp.dot(
        q_x.astype(jnp.bfloat16), w_ref[...], preferred_element_type=jnp.float32
    )

    @pl.when(k == pl.num_programs(2) - 1)
    def _():
        m_scale = params_ref[2]  # scale_x * scale_w, applied once after the integer dot
        o_ref[...] = acc_ref[...] * m_scale + b_ref[...]


# ---------------------------------------------------------------------------
# Kernel 2: output fake-quant (elementwise), given global qo stats in SMEM.
#   params_ref (SMEM f32[3]) = [1/scale_o, zp_o, scale_o]
# ---------------------------------------------------------------------------
def _fq_kernel(params_ref, y_ref, o_ref):
    inv_s = params_ref[0]
    zp = params_ref[1]
    scale = params_ref[2]
    q = jnp.round(jnp.clip(zp + y_ref[...] * inv_s, 0.0, QMAX)) - zp
    o_ref[...] = q * scale


def qlinear_forward(x, weight, bias):
    """x: (M, K) f32, weight: (N, K) f32, bias: (N,) f32 -> (M, N) f32."""
    M, K = x.shape
    N, K2 = weight.shape
    assert K == K2 and bias.shape == (N,)

    tm, tn, tk = _tile_sizes(M, N, K)
    Mp, Np, Kp = _round_up(M, tm), _round_up(N, tn), _round_up(K, tk)

    # ---- one-time weight prep (weight is static in PTQ; cache these in deployment) ----
    sw, zw, isw = _qparams(weight)
    w_lvl = jnp.round(jnp.clip(zw + weight * isw, 0.0, QMAX)) - zw          # (N, K) int levels
    w_lvl_t = jnp.zeros((Kp, Np), jnp.bfloat16).at[:K, :N].set(
        w_lvl.T.astype(jnp.bfloat16))                                        # pre-transposed + padded
    b_pad = jnp.zeros((1, Np), jnp.float32).at[0, :N].set(bias.astype(jnp.float32))

    # ---- per-call activation stats: cheap XLA reduce, scalars go to SMEM ----
    sx, zx, isx = _qparams(x)
    mm_params = jnp.stack([isx, zx, sx * sw]).astype(jnp.float32)            # (3,)

    x_pad = jnp.zeros((Mp, Kp), jnp.float32).at[:M, :K].set(x)
    # (zero padding quantizes exactly to level 0, so it contributes nothing to the dot)

    grid = (Mp // tm, Np // tn, Kp // tk)
    y_pad = pl.pallas_call(
        _qlinear_matmul_kernel,
        out_shape=jax.ShapeDtypeStruct((Mp, Np), jnp.float32),
        grid_spec=pltpu.PrefetchScalarGridSpec(
            num_scalar_prefetch=0,
            grid=grid,
            in_specs=[
                pl.BlockSpec(memory_space=pltpu.MemorySpace.SMEM),           # quant scalars
                pl.BlockSpec((tm, tk), lambda i, j, k: (i, k)),              # x  (f32)
                pl.BlockSpec((tk, tn), lambda i, j, k: (k, j)),              # w levels (bf16, K x N)
                pl.BlockSpec((1, tn), lambda i, j, k: (0, j)),               # bias
            ],
            out_specs=pl.BlockSpec((tm, tn), lambda i, j, k: (i, j)),
            scratch_shapes=[pltpu.VMEM((tm, tn), jnp.float32)],
        ),
        compiler_params=pltpu.CompilerParams(
            dimension_semantics=("parallel", "parallel", "arbitrary"),
            vmem_limit_bytes=32 * 1024 * 1024,
        ),
    )(mm_params, x_pad, w_lvl_t, b_pad)

    # ---- output fake-quant: global stats over the valid region (XLA reduce), then a light
    #      lane-dense elementwise Pallas pass over the padded slab, sliced at the end ----
    y_valid = y_pad[:M, :N]
    so, zo, iso = _qparams(y_valid)
    fq_params = jnp.stack([iso, zo, so]).astype(jnp.float32)

    out_pad = pl.pallas_call(
        _fq_kernel,
        out_shape=jax.ShapeDtypeStruct((Mp, Np), jnp.float32),
        grid_spec=pltpu.PrefetchScalarGridSpec(
            num_scalar_prefetch=0,
            grid=(Mp // tm, Np // tn),
            in_specs=[
                pl.BlockSpec(memory_space=pltpu.MemorySpace.SMEM),
                pl.BlockSpec((tm, tn), lambda i, j: (i, j)),
            ],
            out_specs=pl.BlockSpec((tm, tn), lambda i, j: (i, j)),
        ),
        compiler_params=pltpu.CompilerParams(
            dimension_semantics=("parallel", "parallel"),
            vmem_limit_bytes=32 * 1024 * 1024,
        ),
    )(fq_params, y_pad)

    return out_pad[:M, :N]


def qlinear_reference(x, weight, bias):
    """Pure-JAX reference of the same forward pass.

    Written in the scale-factored form  y = (s_x*s_w) * ((q_x - z_x) @ (q_w - z_w).T) + b,
    which equals  fake_quant(x) @ fake_quant(w).T + b  of the original module exactly in
    real arithmetic (the factored form is what the kernel computes)."""
    sx, zx, isx = _qparams(x)
    sw, zw, isw = _qparams(weight)
    qx = jnp.round(jnp.clip(zx + x * isx, 0.0, QMAX)) - zx
    qw = jnp.round(jnp.clip(zw + weight * isw, 0.0, QMAX)) - zw
    m = sx * sw
    y = m * jnp.dot(qx, qw.T, preferred_element_type=jnp.float32) + bias[None, :]
    so, zo, iso = _qparams(y)
    qy = jnp.round(jnp.clip(zo + y * iso, 0.0, QMAX)) - zo
    return so * qy


if __name__ == "__main__":
    # Small shapes consistent with the module: batch=4, in_features=32, out_features=16
    M, K, N = 4, 32, 16

    key = jax.random.PRNGKey(0)
    kx, kw, kb = jax.random.split(key, 3)

    # Deterministic "nn.Linear"-style init: uniform in [-1/sqrt(K), 1/sqrt(K)]
    bound = 1.0 / (K ** 0.5)
    x = jax.random.normal(kx, (M, K), dtype=jnp.float32)
    weight = jax.random.uniform(kw, (N, K), minval=-bound, maxval=bound, dtype=jnp.float32)
    bias = jax.random.uniform(kb, (N,), minval=-bound, maxval=bound, dtype=jnp.float32)

    out = qlinear_forward(x, weight, bias)
    out = jax.block_until_ready(out)

    ref = qlinear_reference(x, weight, bias)
    assert out.shape == (M, N)
    assert jnp.allclose(out, ref, atol=1e-5, rtol=1e-5), "mismatch vs reference"

    print("KERNEL_OK")
</pallas_src>

<mosaic_0001>
module attributes {stable_mosaic.version = 11 : i64} {
  func.func @_qlinear_matmul_kernel(%arg0: i32, %arg1: i32, %arg2: i32, %arg3: memref<3xf32, #tpu.memory_space<smem>>, %arg4: memref<8x128xf32, #tpu.memory_space<vmem>>, %arg5: memref<128x128xbf16, #tpu.memory_space<vmem>>, %arg6: memref<1x128xf32, #tpu.memory_space<vmem>>, %arg7: memref<8x128xf32, #tpu.memory_space<vmem>>, %arg8: memref<8x128xf32, #tpu.memory_space<vmem>>) attributes {dimension_semantics = [#tpu.dimension_semantics<parallel>, #tpu.dimension_semantics<parallel>, #tpu.dimension_semantics<arbitrary>], iteration_bounds = array<i64: 1, 1, 1>, scalar_prefetch = 0 : i64, scratch_operands = 1 : i64, tpu.core_type = #tpu.core_type<tc>, window_params = [{transform_indices = @transform_0, window_bounds = array<i64: 3>}, {transform_indices = @transform_1, window_bounds = array<i64: 8, 128>}, {transform_indices = @transform_2, window_bounds = array<i64: 128, 128>}, {transform_indices = @transform_3, window_bounds = array<i64: 1, 128>}, {transform_indices = @transform_4, window_bounds = array<i64: 8, 128>}]} {
    %c0_i32 = arith.constant 0 : i32
    %0 = arith.cmpi eq, %arg2, %c0_i32 : i32
    %1 = arith.extui %0 : i1 to i32
    %c0_i32_0 = arith.constant 0 : i32
    %2 = arith.cmpi ne, %1, %c0_i32_0 : i32
    scf.if %2 {
      %cst_13 = arith.constant 0.000000e+00 : f32
      %26 = vector.broadcast %cst_13 : f32 to vector<8x128xf32>
      %c0_14 = arith.constant 0 : index
      %c0_15 = arith.constant 0 : index
      %27 = vector.load %arg8[%c0_14, %c0_15] : memref<8x128xf32, #tpu.memory_space<vmem>>, vector<8x128xf32>
      tpu.vector_store %arg8[%c0_14, %c0_15], %26 {strides = array<i32>} : memref<8x128xf32, #tpu.memory_space<vmem>>, vector<8x128xf32>,
    } else {
    }
    %c0 = arith.constant 0 : index
    %3 = memref.load %arg3[%c0] : memref<3xf32, #tpu.memory_space<smem>>
    %c1 = arith.constant 1 : index
    %4 = memref.load %arg3[%c1] : memref<3xf32, #tpu.memory_space<smem>>
    %c0_1 = arith.constant 0 : index
    %c0_2 = arith.constant 0 : index
    %5 = vector.load %arg4[%c0_1, %c0_2] : memref<8x128xf32, #tpu.memory_space<vmem>>, vector<8x128xf32>
    %6 = vector.broadcast %3 : f32 to vector<8x128xf32>
    %7 = arith.mulf %5, %6 : vector<8x128xf32>
    %8 = vector.broadcast %4 : f32 to vector<8x128xf32>
    %9 = arith.addf %8, %7 : vector<8x128xf32>
    %cst = arith.constant 0.000000e+00 : f32
    %cst_3 = arith.constant 2.550000e+02 : f32
    %10 = vector.broadcast %cst : f32 to vector<8x128xf32>
    %11 = arith.maximumf %10, %9 : vector<8x128xf32>
    %12 = vector.broadcast %cst_3 : f32 to vector<8x128xf32>
    %13 = arith.minimumf %12, %11 : vector<8x128xf32>
    %14 = math.roundeven %13 : vector<8x128xf32>
    %15 = vector.broadcast %4 : f32 to vector<8x128xf32>
    %16 = arith.subf %14, %15 : vector<8x128xf32>
    %c0_4 = arith.constant 0 : index
    %c0_5 = arith.constant 0 : index
    %17 = vector.load %arg8[%c0_4, %c0_5] : memref<8x128xf32, #tpu.memory_space<vmem>>, vector<8x128xf32>
    %18 = arith.truncf %16 : vector<8x128xf32> to vector<8x128xbf16>
    %c0_6 = arith.constant 0 : index
    %c0_7 = arith.constant 0 : index
    %19 = vector.load %arg5[%c0_6, %c0_7] : memref<128x128xbf16, #tpu.memory_space<vmem>>, vector<128x128xbf16>
    %cst_8 = arith.constant dense<0.000000e+00> : vector<8x128xf32>
    %20 = tpu.matmul %18, %19, %cst_8 {dimension_numbers = #tpu.dot_dimension_numbers<[1], [0], [0], [1], [0, 0, 1, 1], [], []>} : vector<8x128xbf16>, vector<128x128xbf16>, vector<8x128xf32> -> vector<8x128xf32>
    %21 = arith.addf %17, %20 : vector<8x128xf32>
    %c0_9 = arith.constant 0 : index
    %c0_10 = arith.constant 0 : index
    %22 = vector.load %arg8[%c0_9, %c0_10] : memref<8x128xf32, #tpu.memory_space<vmem>>, vector<8x128xf32>
    tpu.vector_store %arg8[%c0_9, %c0_10], %21 {strides = array<i32>} : memref<8x128xf32, #tpu.memory_space<vmem>>, vector<8x128xf32>,
    %c0_i32_11 = arith.constant 0 : i32
    %23 = arith.cmpi eq, %arg2, %c0_i32_11 : i32
    %24 = arith.extui %23 : i1 to i32
    %c0_i32_12 = arith.constant 0 : i32
    %25 = arith.cmpi ne, %24, %c0_i32_12 : i32
    scf.if %25 {
      %c2 = arith.constant 2 : index
      %26 = memref.load %arg3[%c2] : memref<3xf32, #tpu.memory_space<smem>>
      %c0_13 = arith.constant 0 : index
      %c0_14 = arith.constant 0 : index
      %27 = vector.load %arg8[%c0_13, %c0_14] : memref<8x128xf32, #tpu.memory_space<vmem>>, vector<8x128xf32>
      %28 = vector.broadcast %26 : f32 to vector<8x128xf32>
      %29 = arith.mulf %27, %28 : vector<8x128xf32>
      %c0_15 = arith.constant 0 : index
      %c0_16 = arith.constant 0 : index
      %30 = vector.load %arg6[%c0_15, %c0_16] : memref<1x128xf32, #tpu.memory_space<vmem>>, vector<1x128xf32>
      %31 = vector.broadcast %30 : vector<1x128xf32> to vector<8x128xf32>
      %32 = arith.addf %29, %31 : vector<8x128xf32>
      %c0_17 = arith.constant 0 : index
      %c0_18 = arith.constant 0 : index
      %33 = vector.load %arg7[%c0_17, %c0_18] : memref<8x128xf32, #tpu.memory_space<vmem>>, vector<8x128xf32>
      tpu.vector_store %arg7[%c0_17, %c0_18], %32 {strides = array<i32>} : memref<8x128xf32, #tpu.memory_space<vmem>>, vector<8x128xf32>,
    } else {
    }
    return
  }
  func.func @transform_0(%arg0: i32, %arg1: i32, %arg2: i32) -> i32 {
    %c0_i32 = arith.constant 0 : i32
    %c0_i32_0 = arith.constant 0 : i32
    return %c0_i32 : i32
  }
  func.func @transform_1(%arg0: i32, %arg1: i32, %arg2: i32) -> (i32, i32) {
    %c0_i32 = arith.constant 0 : i32
    return %arg0, %arg2 : i32, i32
  }
  func.func @transform_2(%arg0: i32, %arg1: i32, %arg2: i32) -> (i32, i32) {
    %c0_i32 = arith.constant 0 : i32
    return %arg2, %arg1 : i32, i32
  }
  func.func @transform_3(%arg0: i32, %arg1: i32, %arg2: i32) -> (i32, i32) {
    %c0_i32 = arith.constant 0 : i32
    %c0_i32_0 = arith.constant 0 : i32
    return %c0_i32, %arg1 : i32, i32
  }
  func.func @transform_4(%arg0: i32, %arg1: i32, %arg2: i32) -> (i32, i32) {
    %c0_i32 = arith.constant 0 : i32
    return %arg0, %arg1 : i32, i32
  }
}

</mosaic_0001>

<bundles_post_ra>
// kernel: tpu_custom_call.1
= control target key start
LH: loop header
LB: loop body
LE: loop exit
PB: predicated region body
PF: predicated region fallthrough
CT: control target
= control target key end

     0   :  { %9 = vsyncpa [#allocation6], 0  ;;  %s404_s0 = inlined_call_operand.hbm [shape: f32[3], index: 0, kind: input, shape index: {}]   ;;  %s405_s1 = inlined_call_operand.hbm [shape: f32[8,128], index: 1, kind: input, shape index: {}]   ;;  %s406_s2 = inlined_call_operand.hbm [shape: bf16[128,128], index: 2, kind: input, shape index: {}]   ;;  %s407_s3 = inlined_call_operand.vmem [shape: f32[1,128], index: 3, kind: input, shape index: {}]   ;;  %s408_s4 = inlined_call_operand.hbm [shape: f32[8,128], index: 4, kind: output, shape index: {}]  }
   0x1   :  { %10 = vsyncpa [#allocation4], 0 }
   0x2   :  { %11 = vsyncpa [#allocation9], 0 }
   0x3   :  { %12 = vsyncpa [#allocation5], 0  ;;  %s353_s15 = smov [#allocation3]   ;;  %s354_s18 = smov [#allocation7]  }
   0x4   :  { %20 = dma.hbm_to_smem %s404_s0, 16, %s353_s15, [#allocation6]  }
   0x5   :  { %s27_s19 = sshll.u32 %s354_s18, 4  ;;  %s355_s20 = smov [#allocation8]   ;;  %s28_s19 = int_to_ptr.vmem [resolvable:$true] %s27_s19 }
   0x6   :  { %s36_s21 = sshll.u32 %s355_s20, 4  ;;  %s293_s22 = scalar_lea.vmem %s28_s19, 128  ;;  %s37_s21 = int_to_ptr.vmem [resolvable:$true] %s36_s21 }
   0x7   :  { %p294_p0 = scmp.ne.s32.totalorder %s28_s19, %s293_s22  ;;  %p298_p1 = scmp.lt.s32.totalorder %s28_s19, %s28_s19 }
   0x8   :  { %p299_p2 = scmp.lt.s32.totalorder %s293_s22, %s293_s22 }
   0xa   :  { %p300_p3 = por %p299_p2, %p298_p1 }
   0xc   :  { %p301_p4 = pnand %p300_p3, %p294_p0 }
   0xe   :  { %304 = shalt.err (!%p301_p4)
}
   0xf   :  { %30 = dma.hbm_to_vmem [thread:$0]  %s405_s1, 128, %s28_s19, [#allocation4]  }
  0x10   :  { %s313_s25 = scalar_lea.vmem %s37_s21, 1024  ;;  %p318_p6 = scmp.lt.s32.totalorder %s37_s21, %s37_s21 }
  0x11   :  { %p314_p5 = scmp.ne.s32.totalorder %s37_s21, %s313_s25  ;;  %p319_p7 = scmp.lt.s32.totalorder %s313_s25, %s313_s25 }
  0x13   :  { %p320_p8 = por %p319_p7, %p318_p6 }
  0x15   :  { %p321_p9 = pnand %p320_p8, %p314_p5 }
  0x17   :  { %324 = shalt.err (!%p321_p9)
}
  0x18   :  { %s356_s0 = smov 64   ;;  %s357_s26 = smov 4  }
  0x19   :  { %42 = dma.hbm_to_vmem [thread:$0]  %s406_s2, 1024, %s37_s21, [#allocation9], %s356_s0, %s356_s0, %s357_s26  }
  0x1a   :  { %345 = dma.done.wait [#allocation6], 16  }
  0x1b   :  { %346 = vsyncadd [#allocation6], 4294967280 }
  0x1c   :  { %347 = dma.done.wait [#allocation4], 128  }
  0x1d   :  { %348 = vsyncadd [#allocation4], 4294967168 }
  0x1e   :  { %349 = dma.done.wait [#allocation9], 1024  }
  0x1f   :  { %350 = vsyncadd [#allocation9], 4294966272 }
  0x20   :  { %54 = sfence }
  0x21   :  { %v269_v0 = vld [vmem:[#allocation8 + $0x38] sm:$0xff]   ;;  %v358_v1 = vmov 0.0   ;;  %v270_v2 = vld [vmem:[#allocation8 + $0x30] sm:$0xff]   ;;  %vm359_vm0 = vmmov 0   ;;  %v271_v3 = vld [vmem:[#allocation8 + $0x28] sm:$0xff]   ;;  %s61_s1 = sld [smem:[#allocation3]] }
  0x22   :  { %233 = vmatprep.subr.bf16.mxu0 %v358_v1  ;;  %249 = vmatprep.mubr.msk.bf16.mxu0 %vm359_vm0, %v358_v1  ;;  %s395_s2 = sld [smem:[#allocation3 + $0x1]]  ;;  %v272_v4 = vld [vmem:[#allocation8 + $0x20] sm:$0xff]   ;;  %v63_v5 = vld [vmem:[#allocation7] sm:$0xff]  ;;  %v274_v11 = vld [vmem:[#allocation8 + $0x10] sm:$0xff]   ;;  %s360_s6 = smov [#allocation10]  }
  0x23   :  { %234 = vmatpush3.bf16.msra.mxu0 %v269_v0  ;;  %v273_v6 = vld [vmem:[#allocation8 + $0x18] sm:$0xff]   ;;  %v275_v14 = vld [vmem:[#allocation8 + $0x8] sm:$0xff]   ;;  %v276_v19 = vld [vmem:[#allocation8] sm:$0xff]   ;;  %s222_s29 = sld [smem:[#allocation3 + $0x2]]  ;;  %s202_s7 = sshll.u32 %s360_s6, 4  ;;  %s203_s7 = int_to_ptr.vmem [resolvable:$true] %s202_s7 }
  0x24   :  { %235 = vmatprep.subr.bf16.mxu0 %v358_v1  ;;  %v223_v27 = vld [vmem:[%s407_s3] ss:$0 sm:$0xff]  ;;  %s325_s8 = scalar_lea.vmem %s203_s7, 128  ;;  %p330_p11 = scmp.lt.s32.totalorder %s203_s7, %s203_s7 }
  0x25   :  { %p326_p10 = scmp.ne.s32.totalorder %s203_s7, %s325_s8  ;;  %p331_p12 = scmp.lt.s32.totalorder %s325_s8, %s325_s8 }
  0x27   :  { %236 = vmatpush3.bf16.msra.mxu0 %v270_v2  ;;  %v64_v7 = vstv %s61_s1  ;;  %p332_p13 = por %p331_p12, %p330_p11 }
  0x28   :  { %237 = vmatprep.subr.bf16.mxu0 %v358_v1  ;;  %v65_v8 = vmul.f32 %v64_v7, %v63_v5  ;;  %v66_v9 = vstv %s395_s2 }
  0x29   :  { %v185_v25 = vstv %s222_s29  ;;  %p333_p0 = pnand %p332_p13, %p326_p10 }
  0x2a   :  { %v67_v10 = vadd.f32 %v66_v9, %v65_v8 }
  0x2b   :  { %238 = vmatpush3.bf16.msra.mxu0 %v271_v3 }
  0x2c   :  { %239 = vmatprep.subr.bf16.mxu0 %v358_v1  ;;  %v68_v12 = vmax.f32 %v67_v10, 0.0 }
  0x2e   :  { %v69_v13 = vmin.f32 %v68_v12, 255.0 }
  0x2f   :  { %240 = vmatpush3.bf16.msra.mxu0 %v272_v4 }
  0x30   :  { %241 = vmatprep.subr.bf16.mxu0 %v358_v1  ;;  %v255_v15 = vcvt.f32.s32 %v69_v13  ;;  %v253_v16 = vand.u32 2147483647, %v69_v13  ;;  %v258_v18 = vand.u32 2147483648, %v69_v13 }
  0x32   :  { %v256_v17 = vcvt.s32.f32 %v255_v15  ;;  %vm254_vm1 = vcmp.lt.f32.partialorder %v253_v16, 8388608.0 }
  0x33   :  { %242 = vmatpush3.bf16.msra.mxu0 %v273_v6 }
  0x34   :  { %243 = vmatprep.subr.bf16.mxu0 %v358_v1  ;;  %v257_v20 = vand.u32 2147483647, %v256_v17 }
  0x36   :  { %v259_v21 = vor.u32 %v258_v18, %v257_v20 }
  0x37   :  { %244 = vmatpush3.bf16.msra.mxu0 %v274_v11 }
  0x38   :  { %245 = vmatprep.subr.bf16.mxu0 %v358_v1  ;;  %v260_v22 = vsel %vm254_vm1, %v259_v21, %v69_v13 }
  0x39   :  { %v71_v23 = vsub.f32 %v260_v22, %v66_v9 }
  0x3b   :  { %246 = vmatpush3.bf16.msra.mxu0 %v275_v14  ;;  %v73_v24 = vpack.c.bf16 %v71_v23, %v71_v23 }
  0x3c   :  { %247 = vmatprep.subr.bf16.mxu0 %v358_v1 }
  0x3f   :  { %248 = vmatpush3.bf16.msra.mxu0 %v276_v19 }
  0x42   :  { %250 = vmatmul.mubr.bf16.vlgmr.msra.gmra.mxu0 %v73_v24 }
 0x102   :  { %v172_v26 = vpop.f32.mrf.mxu0 }
 0x103   :  { %v186_v28 = vmul.f32 %v185_v25, %v172_v26 }
 0x104   :  { %v251_v29 = vpop.f32.mrf.mxu0 }
 0x105   :  { %v194_v30 = vadd.f32 %v223_v27, %v186_v28 }
 0x106   :  { %v175_v31 = vpop.f32.mrf.mxu0 }
 0x107   :  { %195 = vst [vmem:[#allocation10] sm:$0xff] %v194_v30 }
 0x108   :  { %v252_v32 = vpop.f32.mrf.mxu0 }
 0x109   :  { %336 = shalt.err (!%p333_p0)
}
 0x10a   :  { %205 = dma.vmem_to_hbm [thread:$0]  %s203_s7, 128, %s408_s4, [#allocation5]  }
 0x10b   :  { %351 = dma.done.wait [#allocation5], 128  }
 0x10c   :  { %352 = vsyncadd [#allocation5], 4294967168 }
 0x10d   :  { %209 = vsyncpa [#allocation4], 1 }
 0x10e   :  { %210 = vsyncpa [#allocation9], 1 }
 0x10f   :  { %211 = vsyncpa [#allocation5], 1 }
 0x110   :  { %212 = vsyncpa [#allocation6], 1 }

</bundles_post_ra>
